<compile_context>
chip_gen: v7x
topology: tpu7x:2x2x1
jax: 0.10.0
libtpu: 0.0.40
codegen_flags: <defaults>
</compile_context>

<pallas_src>
import functools

import jax
import jax.numpy as jnp
from jax.experimental import pallas as pl
from jax.experimental.pallas import tpu as pltpu

_LANE = 128          # lane width of a vreg
_SUBLANE = 8         # sublane count of a vreg
_MAX_TILE_B = 2048   # max batch-tile rows (footprint ~6.5 MiB, fits all gens)
_MIN_SPLIT_B = 64    # below this, keep a single exact batch tile
_PAD_BIAS = -1e30    # bias for padded class columns -> exp() underflows to 0


def _round_up(v, m):
    return ((v + m - 1) // m) * m


def _choose_batch_tiling(B):
    """Pick (tile_b, b_pad) with tile_b | b_pad, b_pad >= B.

    Goals: no batch padding whenever possible; >= 2 tiles once B >= 64 so the
    "parallel" axis can shard over v7x's 2 TensorCores; tiles capped at
    _MAX_TILE_B rows so VMEM stays small on every generation.
    """
    if B < _MIN_SPLIT_B:
        return B, B                                  # single exact tile, no pad
    target = min(_MAX_TILE_B, _round_up((B + 1) // 2, _SUBLANE))
    if B % target == 0:
        return target, B                             # exact split, no pad
    if B % _SUBLANE == 0:
        # largest multiple-of-8 divisor of B that is <= target (no padding copy)
        cand = target
        floor = max(_SUBLANE, target // 4)
        while cand >= floor:
            if B % cand == 0:
                return cand, B
            cand -= _SUBLANE
    # fall back: minimal zero padding of the batch
    return target, _round_up(B, target)


def agent_mlp_kernel(x_ref, w1_ref, b1_ref, w2_ref, b2_ref, w3_ref, b3_ref, o_ref):
    bf16, f32 = jnp.bfloat16, jnp.float32
    # fc1 + relu — activations cast to bf16 in-register (no HBM cost); weights
    # are bf16; accumulation in f32; bias/relu in f32 (v5e-friendly).
    h1 = jnp.dot(x_ref[...].astype(bf16), w1_ref[...], preferred_element_type=f32)
    h1 = jnp.maximum(h1 + b1_ref[...], 0.0)
    # fc2 + relu
    h2 = jnp.dot(h1.astype(bf16), w2_ref[...], preferred_element_type=f32)
    h2 = jnp.maximum(h2 + b2_ref[...], 0.0)
    # fc3 — padded class columns have zero weights and a -1e30 bias, so they
    # contribute exp(-huge) == 0 to the softmax normalization below.
    logits = jnp.dot(h2.astype(bf16), w3_ref[...], preferred_element_type=f32)
    logits = logits + b3_ref[...]
    # log_softmax over the class axis (dim=1)
    m = jnp.max(logits, axis=-1, keepdims=True)
    shifted = logits - m
    lse = jnp.log(jnp.sum(jnp.exp(shifted), axis=-1, keepdims=True))
    o_ref[...] = shifted - lse


def _nbytes(a):
    return a.size * a.dtype.itemsize


@functools.partial(jax.jit, static_argnames=("num_classes",))
def agent_forward(x, w1p, b1p, w2p, b2p, w3p, b3p, *, num_classes=4):
    """x: (B, d_in) f32; padded params from pad_params(). Returns (B, num_classes)."""
    B, d_in = x.shape
    h_pad = w1p.shape[1]
    c_pad = w3p.shape[1]

    tile_b, b_pad = _choose_batch_tiling(B)
    if b_pad != B:
        # Only pay for a padded copy when the tiling genuinely needs it.
        xp = jnp.zeros((b_pad, d_in), x.dtype).at[:B].set(x)
    else:
        xp = x

    # Explicit VMEM budget: double-buffered x/out blocks, weights, and
    # headroom for h1/h2/logits scratch.  Generous but well under every
    # generation's physical VMEM (incl. v7x's 64 MiB).
    weight_bytes = sum(_nbytes(a) for a in (w1p, b1p, w2p, b2p, w3p, b3p))
    vmem_bytes = (2 * tile_b * d_in * 4          # x double-buffer
                  + 2 * tile_b * c_pad * 4       # out double-buffer
                  + 2 * weight_bytes             # weight buffers
                  + 4 * tile_b * h_pad * 4)      # intermediates headroom
    vmem_limit = int(min(max(2 * vmem_bytes, 32 << 20), 100 << 20))

    grid = (b_pad // tile_b,)
    out = pl.pallas_call(
        agent_mlp_kernel,
        out_shape=jax.ShapeDtypeStruct((b_pad, c_pad), jnp.float32),
        grid_spec=pltpu.PrefetchScalarGridSpec(
            num_scalar_prefetch=0,
            grid=grid,
            in_specs=[
                pl.BlockSpec((tile_b, d_in), lambda i: (i, 0)),   # x   (pipelined, un-padded K)
                pl.BlockSpec((d_in, h_pad), lambda i: (0, 0)),    # W1  (VMEM-resident)
                pl.BlockSpec((1, h_pad), lambda i: (0, 0)),       # b1
                pl.BlockSpec((h_pad, h_pad), lambda i: (0, 0)),   # W2
                pl.BlockSpec((1, h_pad), lambda i: (0, 0)),       # b2
                pl.BlockSpec((h_pad, c_pad), lambda i: (0, 0)),   # W3
                pl.BlockSpec((1, c_pad), lambda i: (0, 0)),       # b3
            ],
            out_specs=pl.BlockSpec((tile_b, c_pad), lambda i: (i, 0)),
        ),
        compiler_params=pltpu.CompilerParams(
            dimension_semantics=("parallel",),  # v7x: shard batch tiles over 2 TCs
            vmem_limit_bytes=vmem_limit,
        ),
    )(xp, w1p, b1p, w2p, b2p, w3p, b3p)
    return out[:B, :num_classes]


def init_params(key, n, hidden, num_classes=4):
    """Deterministic synthetic params with PyTorch-Linear-like uniform init.

    Stored transposed vs. torch, i.e. (in_features, out_features), so the
    kernel computes x @ W directly on the MXU.
    """
    d_in = n * n
    ks = jax.random.split(key, 6)

    def linear(kw, kb, fan_in, fan_out):
        bound = 1.0 / jnp.sqrt(fan_in)
        w = jax.random.uniform(kw, (fan_in, fan_out), jnp.float32, -bound, bound)
        b = jax.random.uniform(kb, (1, fan_out), jnp.float32, -bound, bound)
        return w, b

    w1, b1 = linear(ks[0], ks[1], d_in, hidden)
    w2, b2 = linear(ks[2], ks[3], hidden, hidden)
    w3, b3 = linear(ks[4], ks[5], hidden, num_classes)
    return w1, b1, w2, b2, w3, b3


def pad_params(w1, b1, w2, b2, w3, b3):
    """One-time param prep: pad the N dims to 128 lanes, weights in bf16.

    K of W1 stays un-padded (= d_in) so x can be streamed without padding.
    Biases stay f32 so post-matmul math runs on the f32 VPU/EUP path (v5e).
    """
    d_in, hidden = w1.shape
    n_cls = w3.shape[1]
    h_pad = _round_up(hidden, _LANE)
    c_pad = _round_up(n_cls, _LANE)
    bf16 = jnp.bfloat16

    w1p = jnp.zeros((d_in, h_pad), bf16).at[:, :hidden].set(w1.astype(bf16))
    b1p = jnp.zeros((1, h_pad), jnp.float32).at[:, :hidden].set(b1)
    w2p = jnp.zeros((h_pad, h_pad), bf16).at[:hidden, :hidden].set(w2.astype(bf16))
    b2p = jnp.zeros((1, h_pad), jnp.float32).at[:, :hidden].set(b2)
    w3p = jnp.zeros((h_pad, c_pad), bf16).at[:hidden, :n_cls].set(w3.astype(bf16))
    # Padded class columns get a huge negative bias so log_softmax ignores them.
    b3p = jnp.full((1, c_pad), _PAD_BIAS, jnp.float32).at[:, :n_cls].set(b3)
    return w1p, b1p, w2p, b2p, w3p, b3p


if __name__ == "__main__":
    n, hidden, batch = 4, 32, 8  # input features = n**2 = 16, classes = 4
    key = jax.random.PRNGKey(0)
    kx, kp = jax.random.split(key)

    x = jax.random.normal(kx, (batch, n * n), jnp.float32)
    params = init_params(kp, n, hidden)
    padded = pad_params(*params)

    out = agent_forward(x, *padded, num_classes=4)
    out = jax.block_until_ready(out)

    # Pure-JAX f32 reference on the unpadded params.  Tolerance covers the
    # bf16 quantization of matmul operands in the kernel (accumulation is f32).
    w1, b1, w2, b2, w3, b3 = params
    h1 = jnp.maximum(x @ w1 + b1, 0.0)
    h2 = jnp.maximum(h1 @ w2 + b2, 0.0)
    ref = jax.nn.log_softmax(h2 @ w3 + b3, axis=1)
    assert out.shape == (batch, 4)
    assert bool(jnp.all(jnp.isfinite(out))), "non-finite output"
    assert jnp.allclose(out, ref, atol=3e-2), "mismatch vs reference"

    print("KERNEL_OK")
</pallas_src>

<mosaic_0001>
module attributes {stable_mosaic.version = 11 : i64} {
  func.func @agent_mlp_kernel(%arg0: i32, %arg1: memref<8x16xf32, #tpu.memory_space<vmem>>, %arg2: memref<16x128xbf16, #tpu.memory_space<vmem>>, %arg3: memref<1x128xf32, #tpu.memory_space<vmem>>, %arg4: memref<128x128xbf16, #tpu.memory_space<vmem>>, %arg5: memref<1x128xf32, #tpu.memory_space<vmem>>, %arg6: memref<128x128xbf16, #tpu.memory_space<vmem>>, %arg7: memref<1x128xf32, #tpu.memory_space<vmem>>, %arg8: memref<8x128xf32, #tpu.memory_space<vmem>>) attributes {dimension_semantics = [#tpu.dimension_semantics<parallel>], iteration_bounds = array<i64: 1>, scalar_prefetch = 0 : i64, scratch_operands = 0 : i64, tpu.core_type = #tpu.core_type<tc>, window_params = [{transform_indices = @transform_0, window_bounds = array<i64: 8, 16>}, {pipeline_mode = #tpu.pipeline_mode<synchronous>, transform_indices = @transform_1, window_bounds = array<i64: 16, 128>}, {pipeline_mode = #tpu.pipeline_mode<synchronous>, transform_indices = @transform_2, window_bounds = array<i64: 1, 128>}, {pipeline_mode = #tpu.pipeline_mode<synchronous>, transform_indices = @transform_3, window_bounds = array<i64: 128, 128>}, {pipeline_mode = #tpu.pipeline_mode<synchronous>, transform_indices = @transform_4, window_bounds = array<i64: 1, 128>}, {pipeline_mode = #tpu.pipeline_mode<synchronous>, transform_indices = @transform_5, window_bounds = array<i64: 128, 128>}, {pipeline_mode = #tpu.pipeline_mode<synchronous>, transform_indices = @transform_6, window_bounds = array<i64: 1, 128>}, {transform_indices = @transform_7, window_bounds = array<i64: 8, 128>}]} {
    %c0 = arith.constant 0 : index
    %c0_0 = arith.constant 0 : index
    %0 = vector.load %arg1[%c0, %c0_0] : memref<8x16xf32, #tpu.memory_space<vmem>>, vector<8x16xf32>
    %1 = arith.truncf %0 : vector<8x16xf32> to vector<8x16xbf16>
    %c0_1 = arith.constant 0 : index
    %c0_2 = arith.constant 0 : index
    %2 = vector.load %arg2[%c0_1, %c0_2] : memref<16x128xbf16, #tpu.memory_space<vmem>>, vector<16x128xbf16>
    %cst = arith.constant dense<0.000000e+00> : vector<8x128xf32>
    %3 = tpu.matmul %1, %2, %cst {dimension_numbers = #tpu.dot_dimension_numbers<[1], [0], [0], [1], [0, 0, 1, 1], [], []>} : vector<8x16xbf16>, vector<16x128xbf16>, vector<8x128xf32> -> vector<8x128xf32>
    %c0_3 = arith.constant 0 : index
    %c0_4 = arith.constant 0 : index
    %4 = vector.load %arg3[%c0_3, %c0_4] : memref<1x128xf32, #tpu.memory_space<vmem>>, vector<1x128xf32>
    %5 = vector.broadcast %4 : vector<1x128xf32> to vector<8x128xf32>
    %6 = arith.addf %3, %5 : vector<8x128xf32>
    %cst_5 = arith.constant 0.000000e+00 : f32
    %7 = vector.broadcast %cst_5 : f32 to vector<8x128xf32>
    %8 = arith.maximumf %6, %7 : vector<8x128xf32>
    %9 = arith.truncf %8 : vector<8x128xf32> to vector<8x128xbf16>
    %c0_6 = arith.constant 0 : index
    %c0_7 = arith.constant 0 : index
    %10 = vector.load %arg4[%c0_6, %c0_7] : memref<128x128xbf16, #tpu.memory_space<vmem>>, vector<128x128xbf16>
    %cst_8 = arith.constant dense<0.000000e+00> : vector<8x128xf32>
    %11 = tpu.matmul %9, %10, %cst_8 {dimension_numbers = #tpu.dot_dimension_numbers<[1], [0], [0], [1], [0, 0, 1, 1], [], []>} : vector<8x128xbf16>, vector<128x128xbf16>, vector<8x128xf32> -> vector<8x128xf32>
    %c0_9 = arith.constant 0 : index
    %c0_10 = arith.constant 0 : index
    %12 = vector.load %arg5[%c0_9, %c0_10] : memref<1x128xf32, #tpu.memory_space<vmem>>, vector<1x128xf32>
    %13 = vector.broadcast %12 : vector<1x128xf32> to vector<8x128xf32>
    %14 = arith.addf %11, %13 : vector<8x128xf32>
    %cst_11 = arith.constant 0.000000e+00 : f32
    %15 = vector.broadcast %cst_11 : f32 to vector<8x128xf32>
    %16 = arith.maximumf %14, %15 : vector<8x128xf32>
    %17 = arith.truncf %16 : vector<8x128xf32> to vector<8x128xbf16>
    %c0_12 = arith.constant 0 : index
    %c0_13 = arith.constant 0 : index
    %18 = vector.load %arg6[%c0_12, %c0_13] : memref<128x128xbf16, #tpu.memory_space<vmem>>, vector<128x128xbf16>
    %cst_14 = arith.constant dense<0.000000e+00> : vector<8x128xf32>
    %19 = tpu.matmul %17, %18, %cst_14 {dimension_numbers = #tpu.dot_dimension_numbers<[1], [0], [0], [1], [0, 0, 1, 1], [], []>} : vector<8x128xbf16>, vector<128x128xbf16>, vector<8x128xf32> -> vector<8x128xf32>
    %c0_15 = arith.constant 0 : index
    %c0_16 = arith.constant 0 : index
    %20 = vector.load %arg7[%c0_15, %c0_16] : memref<1x128xf32, #tpu.memory_space<vmem>>, vector<1x128xf32>
    %21 = vector.broadcast %20 : vector<1x128xf32> to vector<8x128xf32>
    %22 = arith.addf %19, %21 : vector<8x128xf32>
    %cst_17 = arith.constant dense<0xFF800000> : vector<8xf32>
    %23 = vector.multi_reduction <maximumf>, %22, %cst_17 [1] : vector<8x128xf32> to vector<8xf32>
    %24 = vector.shape_cast %23 : vector<8xf32> to vector<8x1xf32>
    %25 = vector.broadcast %24 : vector<8x1xf32> to vector<8x128xf32>
    %26 = arith.subf %22, %25 : vector<8x128xf32>
    %27 = math.exp %26 : vector<8x128xf32>
    %cst_18 = arith.constant dense<0.000000e+00> : vector<8xf32>
    %28 = vector.multi_reduction <add>, %27, %cst_18 [1] : vector<8x128xf32> to vector<8xf32>
    %29 = vector.shape_cast %28 : vector<8xf32> to vector<8x1xf32>
    %30 = math.log %29 : vector<8x1xf32>
    %31 = vector.broadcast %30 : vector<8x1xf32> to vector<8x128xf32>
    %32 = arith.subf %26, %31 : vector<8x128xf32>
    %c0_19 = arith.constant 0 : index
    %c0_20 = arith.constant 0 : index
    %33 = vector.load %arg8[%c0_19, %c0_20] : memref<8x128xf32, #tpu.memory_space<vmem>>, vector<8x128xf32>
    tpu.vector_store %arg8[%c0_19, %c0_20], %32 {strides = array<i32>} : memref<8x128xf32, #tpu.memory_space<vmem>>, vector<8x128xf32>,
    return
  }
  func.func @transform_0(%arg0: i32) -> (i32, i32) {
    %c0_i32 = arith.constant 0 : i32
    %c0_i32_0 = arith.constant 0 : i32
    return %arg0, %c0_i32 : i32, i32
  }
  func.func @transform_1(%arg0: i32) -> (i32, i32) {
    %c0_i32 = arith.constant 0 : i32
    %c0_i32_0 = arith.constant 0 : i32
    %c0_i32_1 = arith.constant 0 : i32
    return %c0_i32, %c0_i32_0 : i32, i32
  }
  func.func @transform_2(%arg0: i32) -> (i32, i32) {
    %c0_i32 = arith.constant 0 : i32
    %c0_i32_0 = arith.constant 0 : i32
    %c0_i32_1 = arith.constant 0 : i32
    return %c0_i32, %c0_i32_0 : i32, i32
  }
  func.func @transform_3(%arg0: i32) -> (i32, i32) {
    %c0_i32 = arith.constant 0 : i32
    %c0_i32_0 = arith.constant 0 : i32
    %c0_i32_1 = arith.constant 0 : i32
    return %c0_i32, %c0_i32_0 : i32, i32
  }
  func.func @transform_4(%arg0: i32) -> (i32, i32) {
    %c0_i32 = arith.constant 0 : i32
    %c0_i32_0 = arith.constant 0 : i32
    %c0_i32_1 = arith.constant 0 : i32
    return %c0_i32, %c0_i32_0 : i32, i32
  }
  func.func @transform_5(%arg0: i32) -> (i32, i32) {
    %c0_i32 = arith.constant 0 : i32
    %c0_i32_0 = arith.constant 0 : i32
    %c0_i32_1 = arith.constant 0 : i32
    return %c0_i32, %c0_i32_0 : i32, i32
  }
  func.func @transform_6(%arg0: i32) -> (i32, i32) {
    %c0_i32 = arith.constant 0 : i32
    %c0_i32_0 = arith.constant 0 : i32
    %c0_i32_1 = arith.constant 0 : i32
    return %c0_i32, %c0_i32_0 : i32, i32
  }
  func.func @transform_7(%arg0: i32) -> (i32, i32) {
    %c0_i32 = arith.constant 0 : i32
    %c0_i32_0 = arith.constant 0 : i32
    return %arg0, %c0_i32 : i32, i32
  }
}

</mosaic_0001>

<bundles_post_ra>
// kernel: agent_forward.1
= control target key start
LH: loop header
LB: loop body
LE: loop exit
PB: predicated region body
PF: predicated region fallthrough
CT: control target
= control target key end

     0   :  { %12 = vsyncpa [#allocation3], 0  ;;  %s732_s0 = inlined_call_operand.hbm [shape: f32[8,16], index: 0, kind: input, shape index: {}]   ;;  %s733_s1 = inlined_call_operand.hbm [shape: bf16[16,128], index: 1, kind: input, shape index: {}]   ;;  %s734_s2 = inlined_call_operand.vmem [shape: f32[1,128], index: 2, kind: input, shape index: {}]   ;;  %s735_s3 = inlined_call_operand.hbm [shape: bf16[128,128], index: 3, kind: input, shape index: {}]   ;;  %s736_s4 = inlined_call_operand.vmem [shape: f32[1,128], index: 4, kind: input, shape index: {}]   ;;  %s737_s5 = inlined_call_operand.hbm [shape: bf16[128,128], index: 5, kind: input, shape index: {}]   ;;  %s738_s6 = inlined_call_operand.vmem [shape: f32[1,128], index: 6, kind: input, shape index: {}]   ;;  %s739_s7 = inlined_call_operand.vmem [shape: f32[8,128], index: 7, kind: output, shape index: {}]  }
   0x1   :  { %13 = vsyncpa [#allocation5], 0 }
   0x2   :  { %14 = vsyncpa [#allocation8], 0  ;;  %s595_s24 = smov [#allocation4]   ;;  %s501_s28 = scalar_lea.hbm %s733_s1, 128 }
   0x3   :  { %s30_s25 = sshll.u32 %s595_s24, 4  ;;  %p502_p0 = scmp.ne.s32.totalorder %s733_s1, %s501_s28  ;;  %s31_s25 = int_to_ptr.vmem [resolvable:$true] %s30_s25 }
   0x4   :  { %p505_p1 = scmp.lt.u32.totalorder %s501_s28, %s733_s1 }
   0x6   :  { %p507_p2 = pnand %p505_p1, %p502_p0 }
   0x8   :  { %510 = shalt.err (!%p507_p2)
}
   0x9   :  { %s511_s10 = scalar_lea.vmem %s31_s25, 128  ;;  %p516_p4 = scmp.lt.s32.totalorder %s31_s25, %s31_s25 }
   0xa   :  { %p512_p3 = scmp.ne.s32.totalorder %s31_s25, %s511_s10  ;;  %p517_p5 = scmp.lt.s32.totalorder %s511_s10, %s511_s10 }
   0xc   :  { %p518_p6 = por %p517_p5, %p516_p4 }
   0xe   :  { %p519_p7 = pnand %p518_p6, %p512_p3 }
  0x10   :  { %522 = shalt.err (!%p519_p7)
}
  0x11   :  { %s596_s11 = smov 64   ;;  %s597_s12 = smov 4  }
  0x12   :  { %36 = dma.hbm_to_vmem [thread:$0]  %s733_s1, 128, %s31_s25, [#allocation5], %s596_s11, %s596_s11, %s597_s12  }
  0x13   :  { %s598_s15 = smov [#allocation2]   ;;  %s599_s17 = smov [#allocation6]  }
  0x14   :  { %s21_s16 = sshll.u32 %s598_s15, 4  ;;  %s44_s18 = sshll.u32 %s599_s17, 4  ;;  %s22_s16 = int_to_ptr.vmem [resolvable:$true] %s21_s16  ;;  %s45_s18 = int_to_ptr.vmem [resolvable:$true] %s44_s18 }
  0x15   :  { %s523_s21 = scalar_lea.hbm %s732_s0, 128 }
  0x16   :  { %p524_p8 = scmp.ne.s32.totalorder %s732_s0, %s523_s21  ;;  %p527_p9 = scmp.lt.u32.totalorder %s523_s21, %s732_s0 }
  0x18   :  { %p529_p10 = pnand %p527_p9, %p524_p8 }
  0x1a   :  { %532 = shalt.err (!%p529_p10)
}
  0x1b   :  { %s533_s1 = scalar_lea.vmem %s22_s16, 128  ;;  %p538_p12 = scmp.lt.s32.totalorder %s22_s16, %s22_s16 }
  0x1c   :  { %p534_p11 = scmp.ne.s32.totalorder %s22_s16, %s533_s1  ;;  %p539_p13 = scmp.lt.s32.totalorder %s533_s1, %s533_s1 }
  0x1e   :  { %p540_p0 = por %p539_p13, %p538_p12 }
  0x20   :  { %p541_p1 = pnand %p540_p0, %p534_p11 }
  0x22   :  { %544 = shalt.err (!%p541_p1)
}
  0x23   :  { %24 = dma.hbm_to_vmem [thread:$0]  %s732_s0, 128, %s22_s16, [#allocation3]  }
  0x24   :  { %s545_s30 = scalar_lea.hbm %s735_s3, 1024 }
  0x25   :  { %p546_p2 = scmp.ne.s32.totalorder %s735_s3, %s545_s30  ;;  %p549_p3 = scmp.lt.u32.totalorder %s545_s30, %s735_s3 }
  0x27   :  { %p551_p4 = pnand %p549_p3, %p546_p2 }
  0x29   :  { %554 = shalt.err (!%p551_p4)
}
  0x2a   :  { %s555_s14 = scalar_lea.vmem %s45_s18, 1024  ;;  %p560_p6 = scmp.lt.s32.totalorder %s45_s18, %s45_s18 }
  0x2b   :  { %p556_p5 = scmp.ne.s32.totalorder %s45_s18, %s555_s14  ;;  %p561_p7 = scmp.lt.s32.totalorder %s555_s14, %s555_s14 }
  0x2d   :  { %p562_p8 = por %p561_p7, %p560_p6 }
  0x2f   :  { %p563_p9 = pnand %p562_p8, %p556_p5 }
  0x31   :  { %566 = shalt.err (!%p563_p9)
}
  0x32   :  { %50 = dma.hbm_to_vmem [thread:$0]  %s735_s3, 1024, %s45_s18, [#allocation5], %s596_s11, %s596_s11, %s597_s12  }
  0x33   :  { %s600_s16 = smov [#allocation7]   ;;  %s567_s21 = scalar_lea.hbm %s737_s5, 1024 }
  0x34   :  { %s58_s17 = sshll.u32 %s600_s16, 4  ;;  %p568_p10 = scmp.ne.s32.totalorder %s737_s5, %s567_s21  ;;  %s59_s17 = int_to_ptr.vmem [resolvable:$true] %s58_s17 }
  0x35   :  { %p571_p11 = scmp.lt.u32.totalorder %s567_s21, %s737_s5 }
  0x37   :  { %p573_p12 = pnand %p571_p11, %p568_p10 }
  0x39   :  { %576 = shalt.err (!%p573_p12)
}
  0x3a   :  { %s577_s1 = scalar_lea.vmem %s59_s17, 1024  ;;  %p582_p0 = scmp.lt.s32.totalorder %s59_s17, %s59_s17 }
  0x3b   :  { %p578_p13 = scmp.ne.s32.totalorder %s59_s17, %s577_s1  ;;  %p583_p1 = scmp.lt.s32.totalorder %s577_s1, %s577_s1 }
  0x3d   :  { %p584_p2 = por %p583_p1, %p582_p0 }
  0x3f   :  { %p585_p3 = pnand %p584_p2, %p578_p13 }
  0x41   :  { %588 = shalt.err (!%p585_p3)
}
  0x42   :  { %64 = dma.hbm_to_vmem [thread:$0]  %s737_s5, 1024, %s59_s17, [#allocation8], %s596_s11, %s596_s11, %s597_s12  }
  0x43   :  { %589 = dma.done.wait [#allocation3], 128  }
  0x44   :  { %590 = vsyncadd [#allocation3], 4294967168 }
  0x45   :  { %591 = dma.done.wait [#allocation5], 1152  }
  0x46   :  { %592 = vsyncadd [#allocation5], 4294966144 }
  0x47   :  { %593 = dma.done.wait [#allocation8], 1024  }
  0x48   :  { %594 = vsyncadd [#allocation8], 4294966272  ;;  %v601_v0 = vmov 0.0   ;;  %vm602_vm0 = vmmov 0   ;;  %v480_v1 = vld [vmem:[#allocation4] sm:$0xff]   ;;  %v80_v2 = vld [vmem:[#allocation2] sm:$0xff] }
  0x49   :  { %426 = vmatprep.subr.bf16.mxu0 %v601_v0  ;;  %428 = vmatprep.mubr.msk.bf16.mxu0 %vm602_vm0, %v601_v0  ;;  %v81_v3 = vpack.c.bf16 %v80_v2, %v80_v2  ;;  %vm97_vm1 = vcmask 130048   ;;  %v481_v4 = vld [vmem:[#allocation6] sm:$0xff]   ;;  %v482_v5 = vld [vmem:[#allocation6 + $0x8] sm:$0xff]   ;;  %v483_v6 = vld [vmem:[#allocation6 + $0x10] sm:$0xff]  }
  0x4a   :  { %432 = vmatprep.subr.bf16.mxu1 %v601_v0  ;;  %448 = vmatprep.mubr.msk.bf16.mxu1 %vm602_vm0, %v601_v0  ;;  %v484_v7 = vld [vmem:[#allocation6 + $0x18] sm:$0xff]   ;;  %v485_v8 = vld [vmem:[#allocation6 + $0x20] sm:$0xff]   ;;  %v486_v9 = vld [vmem:[#allocation6 + $0x28] sm:$0xff]  }
  0x4b   :  { %427 = vmatpush3.bf16.msra.mxu0 %v480_v1  ;;  %433 = vmatpush3.bf16.msra.mxu1 %v481_v4  ;;  %v487_v10 = vld [vmem:[#allocation6 + $0x30] sm:$0xff]   ;;  %v488_v11 = vld [vmem:[#allocation6 + $0x38] sm:$0xff]   ;;  %v489_v12 = vld [vmem:[#allocation7] sm:$0xff]  }
  0x4c   :  { %452 = vmatprep.subr.bf16.mxu0 %v601_v0  ;;  %434 = vmatprep.subr.bf16.mxu1 %v601_v0  ;;  %v490_v13 = vld [vmem:[#allocation7 + $0x8] sm:$0xff]   ;;  %v491_v14 = vld [vmem:[#allocation7 + $0x10] sm:$0xff]   ;;  %v492_v15 = vld [vmem:[#allocation7 + $0x18] sm:$0xff]  }
  0x4d   :  { %v493_v16 = vld [vmem:[#allocation7 + $0x20] sm:$0xff]   ;;  %v494_v17 = vld [vmem:[#allocation7 + $0x28] sm:$0xff]   ;;  %v385_v18 = vld [vmem:[%s734_s2] ss:$0 sm:$0xff] }
  0x4e   :  { %429 = vmatmul.mubr.msk.bf16.vlgmr.msra.gmra.mrb[0].mxu0 %vm97_vm1, %v81_v3  ;;  %v495_v26 = vld [vmem:[#allocation7 + $0x30] sm:$0xff]   ;;  %v496_v27 = vld [vmem:[#allocation7 + $0x38] sm:$0xff]  }
  0x4f   :  { %468 = vmatprep.mubr.msk.bf16.mxu0 %vm602_vm0, %v601_v0  ;;  %435 = vmatpush3.bf16.msra.mxu1 %v482_v5  ;;  %v388_v28 = vld [vmem:[%s736_s4] ss:$0 sm:$0xff] }
  0x50   :  { %436 = vmatprep.subr.bf16.mxu1 %v601_v0  ;;  %453 = vmatpush3.bf16.msra.mxu0 %v489_v12  ;;  %v397_v36 = vld [vmem:[%s738_s6] ss:$0 sm:$0xff] }
  0x51   :  { %454 = vmatprep.subr.bf16.mxu0 %v601_v0 }
  0x53   :  { %437 = vmatpush3.bf16.msra.mxu1 %v483_v6 }
  0x54   :  { %438 = vmatprep.subr.bf16.mxu1 %v601_v0  ;;  %455 = vmatpush3.bf16.msra.mxu0 %v490_v13 }
  0x55   :  { %456 = vmatprep.subr.bf16.mxu0 %v601_v0 }
  0x57   :  { %439 = vmatpush3.bf16.msra.mxu1 %v484_v7 }
  0x58   :  { %440 = vmatprep.subr.bf16.mxu1 %v601_v0  ;;  %457 = vmatpush3.bf16.msra.mxu0 %v491_v14 }
  0x59   :  { %458 = vmatprep.subr.bf16.mxu0 %v601_v0 }
  0x5b   :  { %441 = vmatpush3.bf16.msra.mxu1 %v485_v8 }
  0x5c   :  { %442 = vmatprep.subr.bf16.mxu1 %v601_v0  ;;  %459 = vmatpush3.bf16.msra.mxu0 %v492_v15 }
  0x5d   :  { %460 = vmatprep.subr.bf16.mxu0 %v601_v0 }
  0x5f   :  { %443 = vmatpush3.bf16.msra.mxu1 %v486_v9 }
  0x60   :  { %444 = vmatprep.subr.bf16.mxu1 %v601_v0  ;;  %461 = vmatpush3.bf16.msra.mxu0 %v493_v16 }
  0x61   :  { %462 = vmatprep.subr.bf16.mxu0 %v601_v0 }
  0x63   :  { %445 = vmatpush3.bf16.msra.mxu1 %v487_v10 }
  0x64   :  { %446 = vmatprep.subr.bf16.mxu1 %v601_v0  ;;  %463 = vmatpush3.bf16.msra.mxu0 %v494_v17 }
  0x65   :  { %464 = vmatprep.subr.bf16.mxu0 %v601_v0 }
  0x67   :  { %447 = vmatpush3.bf16.msra.mxu1 %v488_v11 }
  0x68   :  { %465 = vmatpush3.bf16.msra.mxu0 %v495_v26 }
  0x69   :  { %466 = vmatprep.subr.bf16.mxu0 %v601_v0 }
  0x6c   :  { %467 = vmatpush3.bf16.msra.mxu0 %v496_v27 }
 0x121   :  { %v135_v19 = vpop.f32.mrb[0].mxu0 }
 0x122   :  { %v136_v20 = vadd.f32 %v385_v18, %v135_v19  ;;  %v430_v21 = vpop.f32.mrb[1].mxu0 }
 0x123   :  { %v138_v22 = vpop.f32.mrb[2].mxu0 }
 0x124   :  { %v141_v23 = vmax.f32 %v136_v20, 0.0  ;;  %v431_v24 = vpop.f32.mrb[3].mxu0 }
 0x126   :  { %v142_v25 = vpack.c.bf16 %v141_v23, %v141_v23 }
 0x128   :  { %449 = vmatmul.mubr.bf16.vlgmr.msra.gmra.mrb[0].mxu1 %v142_v25 }
 0x1fb   :  { %v248_v29 = vpop.f32.mrb[0].mxu1 }
 0x1fc   :  { %v249_v30 = vadd.f32 %v388_v28, %v248_v29  ;;  %v450_v31 = vpop.f32.mrb[1].mxu1 }
 0x1fd   :  { %v251_v32 = vpop.f32.mrb[2].mxu1 }
 0x1fe   :  { %v254_v33 = vmax.f32 %v249_v30, 0.0  ;;  %v451_v34 = vpop.f32.mrb[3].mxu1 }
 0x200   :  { %v255_v35 = vpack.c.bf16 %v254_v33, %v254_v33 }
 0x202   :  { %469 = vmatmul.mubr.bf16.vlgmr.msra.gmra.mrb[4].mxu0 %v255_v35 }
 0x2d5   :  { %v361_v37 = vpop.f32.mrb[4].mxu0 }
 0x2d6   :  { %v362_v38 = vadd.f32 %v397_v36, %v361_v37  ;;  %v470_v39 = vpop.f32.mrb[5].mxu0 }
 0x2d7   :  { %v364_v40 = vpop.f32.mrb[6].mxu0 }
 0x2d8   :  { %367 = vmax.xlane.f32.xlu0 %v362_v38  ;;  %v471_v41 = vpop.f32.mrb[7].mxu0 }
 0x365   :  { %v368_v42 = vpop.xlane.xlu0 %367 }
 0x366   :  { %v369_v43 = vsub.f32 %v362_v38, %v368_v42 }
 0x368   :  { %v370_v44 = vmul.f32 1.442695, %v369_v43 }
 0x36a   :  { %497 = vpow2.f32 %v370_v44 }
 0x374   :  { %v498_v45 = vpop.eup %497 }
 0x375   :  { %372 = vadd.xlane.f32.xlu0 %v498_v45 }
 0x402   :  { %v373_v46 = vpop.xlane.xlu0 %372 }
 0x403   :  { %499 = vlog2.f32 %v373_v46 }
 0x40d   :  { %v500_v47 = vpop.eup %499 }
 0x40e   :  { %v375_v48 = vmul.f32 0.6931472, %v500_v47 }
 0x410   :  { %v376_v49 = vsub.f32 %v369_v43, %v375_v48 }
 0x412   :  { %377 = vst [vmem:[%s739_s7] sm:$0xff] %v376_v49 }
 0x413   :  { %382 = vsyncpa [#allocation3], 1 }
 0x414   :  { %383 = vsyncpa [#allocation5], 1 }
 0x415   :  { %384 = vsyncpa [#allocation8], 1 }

</bundles_post_ra>
